<compile_context>
chip_gen: v7x
topology: tpu7x:2x2x1
jax: 0.10.0
libtpu: 0.0.40
codegen_flags: <defaults>
</compile_context>

<pallas_src>
import jax
import jax.numpy as jnp
from jax.experimental import pallas as pl
from jax.experimental.pallas import tpu as pltpu

NEG_SLOPE = 0.01  # F.leaky_relu default
LANE = 128        # TPU lane width
SUBLANE = 8       # f32 sublane count
MAX_TILE_B = 512  # batch tile (rows) — fills the MXU, tiny VMEM footprint


def _leaky_relu(x):
    return jnp.where(x >= 0, x, NEG_SLOPE * x)


def _round_up(n, m):
    return ((n + m - 1) // m) * m


def x_module_kernel(x_ref, w1_ref, b1_ref, w2_ref, b2_ref, o_ref):
    # Layer 1: (TILE_B, Dx_pad) @ (Dx_pad, 128) + (1, 128)
    h = jnp.dot(x_ref[...], w1_ref[...], preferred_element_type=jnp.float32)
    h = _leaky_relu(h + b1_ref[...])
    # Layer 2: (TILE_B, 128) @ (128, 128) + (1, 128)
    out = jnp.dot(h, w2_ref[...], preferred_element_type=jnp.float32)
    out = _leaky_relu(out + b2_ref[...])
    o_ref[...] = out.astype(o_ref.dtype)


def x_module_forward(x, w1, b1, w2, b2):
    """x: (B, x_dim); w1: (x_dim, 100); b1: (1, 100); w2: (100, 32); b2: (1, 32).

    Weights are stored pre-transposed as (in_features, out_features) relative
    to PyTorch nn.Linear, so the kernel does plain x @ W matmuls on the MXU.
    """
    B, x_dim = x.shape
    hidden = w1.shape[1]
    out_dim = w2.shape[1]

    # Pad feature dims to the lane width; pad batch to the tile size.
    xd_p = _round_up(x_dim, LANE)
    hid_p = _round_up(hidden, LANE)
    out_p = _round_up(out_dim, LANE)

    tile_b = min(MAX_TILE_B, _round_up(B, SUBLANE))
    b_p = _round_up(B, tile_b)

    # Zero padding keeps the math exact: padded W columns/rows and bias
    # entries are 0, and leaky_relu(0) == 0, so padded lanes stay 0.
    x_p = jnp.pad(x, ((0, b_p - B), (0, xd_p - x_dim)))
    w1_p = jnp.pad(w1, ((0, xd_p - x_dim), (0, hid_p - hidden)))
    b1_p = jnp.pad(b1, ((0, 0), (0, hid_p - hidden)))
    w2_p = jnp.pad(w2, ((0, hid_p - hidden), (0, out_p - out_dim)))
    b2_p = jnp.pad(b2, ((0, 0), (0, out_p - out_dim)))

    grid = (b_p // tile_b,)

    out_padded = pl.pallas_call(
        x_module_kernel,
        out_shape=jax.ShapeDtypeStruct((b_p, out_p), jnp.float32),
        grid=grid,
        in_specs=[
            # x: tiled along batch, double-buffered per grid step.
            pl.BlockSpec((tile_b, xd_p), lambda i: (i, 0)),
            # Parameters: constant block index -> stay VMEM-resident.
            pl.BlockSpec((xd_p, hid_p), lambda i: (0, 0)),
            pl.BlockSpec((1, hid_p), lambda i: (0, 0)),
            pl.BlockSpec((hid_p, out_p), lambda i: (0, 0)),
            pl.BlockSpec((1, out_p), lambda i: (0, 0)),
        ],
        out_specs=pl.BlockSpec((tile_b, out_p), lambda i: (i, 0)),
        compiler_params=pltpu.CompilerParams(
            dimension_semantics=("parallel",),   # split batch tiles across TCs
            vmem_limit_bytes=32 * 1024 * 1024,   # fits v7x's smaller VMEM
        ),
    )(x_p, w1_p, b1_p, w2_p, b2_p)

    # Slice off batch/lane padding.
    return out_padded[:B, :out_dim]


def init_params(key, x_dim, hidden=100, out=32):
    # Deterministic init mirroring nn.Linear's default U(-1/sqrt(fan_in), 1/sqrt(fan_in)).
    k1, k2, k3, k4 = jax.random.split(key, 4)
    bound1 = 1.0 / jnp.sqrt(x_dim)
    bound2 = 1.0 / jnp.sqrt(hidden)
    w1 = jax.random.uniform(k1, (x_dim, hidden), jnp.float32, -bound1, bound1)
    b1 = jax.random.uniform(k2, (1, hidden), jnp.float32, -bound1, bound1)
    w2 = jax.random.uniform(k3, (hidden, out), jnp.float32, -bound2, bound2)
    b2 = jax.random.uniform(k4, (1, out), jnp.float32, -bound2, bound2)
    return w1, b1, w2, b2


if __name__ == "__main__":
    key = jax.random.PRNGKey(0)
    kx, kp = jax.random.split(key)

    B, X_DIM = 8, 32
    x = jax.random.normal(kx, (B, X_DIM), jnp.float32)
    w1, b1, w2, b2 = init_params(kp, X_DIM)

    out = x_module_forward(x, w1, b1, w2, b2)
    jax.block_until_ready(out)

    # Reference check in plain JAX.
    h_lin = x @ w1 + b1
    ref_h = jnp.where(h_lin >= 0, h_lin, NEG_SLOPE * h_lin)
    o_lin = ref_h @ w2 + b2
    ref = jnp.where(o_lin >= 0, o_lin, NEG_SLOPE * o_lin)

    assert out.shape == (B, 32)
    assert jnp.allclose(out, ref, atol=1e-5, rtol=1e-5)

    print("KERNEL_OK")
</pallas_src>

<mosaic_0001>
module attributes {stable_mosaic.version = 11 : i64} {
  func.func @x_module_kernel(%arg0: i32, %arg1: memref<8x128xf32, #tpu.memory_space<vmem>>, %arg2: memref<128x128xf32, #tpu.memory_space<vmem>>, %arg3: memref<1x128xf32, #tpu.memory_space<vmem>>, %arg4: memref<128x128xf32, #tpu.memory_space<vmem>>, %arg5: memref<1x128xf32, #tpu.memory_space<vmem>>, %arg6: memref<8x128xf32, #tpu.memory_space<vmem>>) attributes {dimension_semantics = [#tpu.dimension_semantics<parallel>], iteration_bounds = array<i64: 1>, scalar_prefetch = 0 : i64, scratch_operands = 0 : i64, tpu.core_type = #tpu.core_type<tc>, window_params = [{transform_indices = @transform_0, window_bounds = array<i64: 8, 128>}, {pipeline_mode = #tpu.pipeline_mode<synchronous>, transform_indices = @transform_1, window_bounds = array<i64: 128, 128>}, {pipeline_mode = #tpu.pipeline_mode<synchronous>, transform_indices = @transform_2, window_bounds = array<i64: 1, 128>}, {pipeline_mode = #tpu.pipeline_mode<synchronous>, transform_indices = @transform_3, window_bounds = array<i64: 128, 128>}, {pipeline_mode = #tpu.pipeline_mode<synchronous>, transform_indices = @transform_4, window_bounds = array<i64: 1, 128>}, {transform_indices = @transform_5, window_bounds = array<i64: 8, 128>}]} {
    %c0 = arith.constant 0 : index
    %c0_0 = arith.constant 0 : index
    %0 = vector.load %arg1[%c0, %c0_0] : memref<8x128xf32, #tpu.memory_space<vmem>>, vector<8x128xf32>
    %c0_1 = arith.constant 0 : index
    %c0_2 = arith.constant 0 : index
    %1 = vector.load %arg2[%c0_1, %c0_2] : memref<128x128xf32, #tpu.memory_space<vmem>>, vector<128x128xf32>
    %cst = arith.constant dense<0.000000e+00> : vector<8x128xf32>
    %2 = tpu.matmul %0, %1, %cst {dimension_numbers = #tpu.dot_dimension_numbers<[1], [0], [0], [1], [0, 0, 1, 1], [], []>} : vector<8x128xf32>, vector<128x128xf32>, vector<8x128xf32> -> vector<8x128xf32>
    %c0_3 = arith.constant 0 : index
    %c0_4 = arith.constant 0 : index
    %3 = vector.load %arg3[%c0_3, %c0_4] : memref<1x128xf32, #tpu.memory_space<vmem>>, vector<1x128xf32>
    %4 = vector.broadcast %3 : vector<1x128xf32> to vector<8x128xf32>
    %5 = arith.addf %2, %4 : vector<8x128xf32>
    %cst_5 = arith.constant 0.000000e+00 : f32
    %6 = vector.broadcast %cst_5 : f32 to vector<8x128xf32>
    %7 = arith.cmpf oge, %5, %6 : vector<8x128xf32>
    %cst_6 = arith.constant 0.00999999977 : f32
    %8 = vector.broadcast %cst_6 : f32 to vector<8x128xf32>
    %9 = arith.mulf %8, %5 : vector<8x128xf32>
    %10 = arith.select %7, %5, %9 : vector<8x128xi1>, vector<8x128xf32>
    %c0_7 = arith.constant 0 : index
    %c0_8 = arith.constant 0 : index
    %11 = vector.load %arg4[%c0_7, %c0_8] : memref<128x128xf32, #tpu.memory_space<vmem>>, vector<128x128xf32>
    %cst_9 = arith.constant dense<0.000000e+00> : vector<8x128xf32>
    %12 = tpu.matmul %10, %11, %cst_9 {dimension_numbers = #tpu.dot_dimension_numbers<[1], [0], [0], [1], [0, 0, 1, 1], [], []>} : vector<8x128xf32>, vector<128x128xf32>, vector<8x128xf32> -> vector<8x128xf32>
    %c0_10 = arith.constant 0 : index
    %c0_11 = arith.constant 0 : index
    %13 = vector.load %arg5[%c0_10, %c0_11] : memref<1x128xf32, #tpu.memory_space<vmem>>, vector<1x128xf32>
    %14 = vector.broadcast %13 : vector<1x128xf32> to vector<8x128xf32>
    %15 = arith.addf %12, %14 : vector<8x128xf32>
    %cst_12 = arith.constant 0.000000e+00 : f32
    %16 = vector.broadcast %cst_12 : f32 to vector<8x128xf32>
    %17 = arith.cmpf oge, %15, %16 : vector<8x128xf32>
    %cst_13 = arith.constant 0.00999999977 : f32
    %18 = vector.broadcast %cst_13 : f32 to vector<8x128xf32>
    %19 = arith.mulf %18, %15 : vector<8x128xf32>
    %20 = arith.select %17, %15, %19 : vector<8x128xi1>, vector<8x128xf32>
    %c0_14 = arith.constant 0 : index
    %c0_15 = arith.constant 0 : index
    %21 = vector.load %arg6[%c0_14, %c0_15] : memref<8x128xf32, #tpu.memory_space<vmem>>, vector<8x128xf32>
    tpu.vector_store %arg6[%c0_14, %c0_15], %20 {strides = array<i32>} : memref<8x128xf32, #tpu.memory_space<vmem>>, vector<8x128xf32>,
    return
  }
  func.func @transform_0(%arg0: i32) -> (i32, i32) {
    %c0_i32 = arith.constant 0 : i32
    %c0_i32_0 = arith.constant 0 : i32
    return %arg0, %c0_i32 : i32, i32
  }
  func.func @transform_1(%arg0: i32) -> (i32, i32) {
    %c0_i32 = arith.constant 0 : i32
    %c0_i32_0 = arith.constant 0 : i32
    %c0_i32_1 = arith.constant 0 : i32
    return %c0_i32, %c0_i32_0 : i32, i32
  }
  func.func @transform_2(%arg0: i32) -> (i32, i32) {
    %c0_i32 = arith.constant 0 : i32
    %c0_i32_0 = arith.constant 0 : i32
    %c0_i32_1 = arith.constant 0 : i32
    return %c0_i32, %c0_i32_0 : i32, i32
  }
  func.func @transform_3(%arg0: i32) -> (i32, i32) {
    %c0_i32 = arith.constant 0 : i32
    %c0_i32_0 = arith.constant 0 : i32
    %c0_i32_1 = arith.constant 0 : i32
    return %c0_i32, %c0_i32_0 : i32, i32
  }
  func.func @transform_4(%arg0: i32) -> (i32, i32) {
    %c0_i32 = arith.constant 0 : i32
    %c0_i32_0 = arith.constant 0 : i32
    %c0_i32_1 = arith.constant 0 : i32
    return %c0_i32, %c0_i32_0 : i32, i32
  }
  func.func @transform_5(%arg0: i32) -> (i32, i32) {
    %c0_i32 = arith.constant 0 : i32
    %c0_i32_0 = arith.constant 0 : i32
    return %arg0, %c0_i32 : i32, i32
  }
}

</mosaic_0001>

<bundles_post_ra>
// kernel: tpu_custom_call.1
= control target key start
LH: loop header
LB: loop body
LE: loop exit
PB: predicated region body
PF: predicated region fallthrough
CT: control target
= control target key end

     0   :  { %10 = vsyncpa [#allocation3], 0  ;;  %s642_s0 = inlined_call_operand.hbm [shape: f32[8,128], index: 0, kind: input, shape index: {}]   ;;  %s643_s1 = inlined_call_operand.hbm [shape: f32[128,128], index: 1, kind: input, shape index: {}]   ;;  %s644_s2 = inlined_call_operand.vmem [shape: f32[1,128], index: 2, kind: input, shape index: {}]   ;;  %s645_s3 = inlined_call_operand.hbm [shape: f32[128,128], index: 3, kind: input, shape index: {}]   ;;  %s646_s4 = inlined_call_operand.vmem [shape: f32[1,128], index: 4, kind: input, shape index: {}]   ;;  %s647_s5 = inlined_call_operand.hbm [shape: f32[8,128], index: 5, kind: output, shape index: {}]  }
   0x1   :  { %11 = vsyncpa [#allocation6], 0 }
   0x2   :  { %12 = vsyncpa [#allocation4], 0  ;;  %s527_s18 = smov [#allocation5]   ;;  %s433_s22 = scalar_lea.hbm %s643_s1, 2048 }
   0x3   :  { %s28_s19 = sshll.u32 %s527_s18, 4  ;;  %p434_p0 = scmp.ne.s32.totalorder %s643_s1, %s433_s22  ;;  %s29_s19 = int_to_ptr.vmem [resolvable:$true] %s28_s19 }
   0x4   :  { %p437_p1 = scmp.lt.u32.totalorder %s433_s22, %s643_s1 }
   0x6   :  { %p439_p2 = pnand %p437_p1, %p434_p0 }
   0x8   :  { %442 = shalt.err (!%p439_p2)
}
   0x9   :  { %s443_s27 = scalar_lea.vmem %s29_s19, 2048  ;;  %p448_p4 = scmp.lt.s32.totalorder %s29_s19, %s29_s19 }
   0xa   :  { %p444_p3 = scmp.ne.s32.totalorder %s29_s19, %s443_s27  ;;  %p449_p5 = scmp.lt.s32.totalorder %s443_s27, %s443_s27 }
   0xc   :  { %p450_p6 = por %p449_p5, %p448_p4 }
   0xe   :  { %p451_p7 = pnand %p450_p6, %p444_p3 }
  0x10   :  { %454 = shalt.err (!%p451_p7)
}
  0x11   :  { %s528_s28 = smov 128   ;;  %s529_s29 = smov 8  }
  0x12   :  { %34 = dma.hbm_to_vmem [thread:$0]  %s643_s1, 2048, %s29_s19, [#allocation6], %s528_s28, %s528_s28, %s529_s29  }
  0x13   :  { %s530_s7 = smov [#allocation2]   ;;  %s531_s9 = smov [#allocation7]  }
  0x14   :  { %s19_s8 = sshll.u32 %s530_s7, 4  ;;  %s42_s10 = sshll.u32 %s531_s9, 4  ;;  %s20_s8 = int_to_ptr.vmem [resolvable:$true] %s19_s8  ;;  %s43_s10 = int_to_ptr.vmem [resolvable:$true] %s42_s10 }
  0x15   :  { %s455_s13 = scalar_lea.hbm %s642_s0, 128 }
  0x16   :  { %p456_p8 = scmp.ne.s32.totalorder %s642_s0, %s455_s13  ;;  %p459_p9 = scmp.lt.u32.totalorder %s455_s13, %s642_s0 }
  0x18   :  { %p461_p10 = pnand %p459_p9, %p456_p8 }
  0x1a   :  { %464 = shalt.err (!%p461_p10)
}
  0x1b   :  { %s465_s1 = scalar_lea.vmem %s20_s8, 128  ;;  %p470_p12 = scmp.lt.s32.totalorder %s20_s8, %s20_s8 }
  0x1c   :  { %p466_p11 = scmp.ne.s32.totalorder %s20_s8, %s465_s1  ;;  %p471_p13 = scmp.lt.s32.totalorder %s465_s1, %s465_s1 }
  0x1e   :  { %p472_p0 = por %p471_p13, %p470_p12 }
  0x20   :  { %p473_p1 = pnand %p472_p0, %p466_p11 }
  0x22   :  { %476 = shalt.err (!%p473_p1)
}
  0x23   :  { %22 = dma.hbm_to_vmem [thread:$0]  %s642_s0, 128, %s20_s8, [#allocation3]  }
  0x24   :  { %s477_s22 = scalar_lea.hbm %s645_s3, 2048 }
  0x25   :  { %p478_p2 = scmp.ne.s32.totalorder %s645_s3, %s477_s22  ;;  %p481_p3 = scmp.lt.u32.totalorder %s477_s22, %s645_s3 }
  0x27   :  { %p483_p4 = pnand %p481_p3, %p478_p2 }
  0x29   :  { %486 = shalt.err (!%p483_p4)
}
  0x2a   :  { %s487_s27 = scalar_lea.vmem %s43_s10, 2048  ;;  %p492_p6 = scmp.lt.s32.totalorder %s43_s10, %s43_s10 }
  0x2b   :  { %p488_p5 = scmp.ne.s32.totalorder %s43_s10, %s487_s27  ;;  %p493_p7 = scmp.lt.s32.totalorder %s487_s27, %s487_s27 }
  0x2d   :  { %p494_p8 = por %p493_p7, %p492_p6 }
  0x2f   :  { %p495_p9 = pnand %p494_p8, %p488_p5 }
  0x31   :  { %498 = shalt.err (!%p495_p9)
}
  0x32   :  { %48 = dma.hbm_to_vmem [thread:$0]  %s645_s3, 2048, %s43_s10, [#allocation6], %s528_s28, %s528_s28, %s529_s29  }
  0x33   :  { %521 = dma.done.wait [#allocation3], 128  }
  0x34   :  { %522 = vsyncadd [#allocation3], 4294967168 }
  0x35   :  { %523 = dma.done.wait [#allocation6], 4096  }
  0x36   :  { %524 = vsyncadd [#allocation6], 4294963200  ;;  %v532_v0 = vmov 0.0|0.0   ;;  %vm533_vm0 = vmmov 0   ;;  %v534_v1 = vmov 0.0   ;;  %v61_v2 = vld [vmem:[#allocation5] sm:$0xff] }
  0x37   :  { %376 = vmatprep.subr.bf16.mxu0 %v532_v0  ;;  %338 = vmatprep.mubr.msk.f32.mxu0 %vm533_vm0, %v534_v1  ;;  %v62_v3 = vld [vmem:[#allocation5 + $0x8] sm:$0xff]  ;;  %v63_v4 = vld [vmem:[#allocation5 + $0x10] sm:$0xff]  ;;  %v64_v6 = vld [vmem:[#allocation5 + $0x18] sm:$0xff]  ;;  %s535_s7 = smov [#allocation8]  }
  0x38   :  { %400 = vmatprep.subr.bf16.mxu1 %v532_v0  ;;  %373 = vmatprep.mubr.msk.f32.mxu1 %vm533_vm0, %v534_v1  ;;  %v377_v5 = vpack.c.bf16 %v62_v3, %v61_v2  ;;  %v380_v7 = vpack.c.bf16 %v64_v6, %v63_v4  ;;  %v65_v8 = vld [vmem:[#allocation5 + $0x20] sm:$0xff]  ;;  %v66_v9 = vld [vmem:[#allocation5 + $0x28] sm:$0xff]  ;;  %v159_v12 = vld [vmem:[#allocation7 + $0x10] sm:$0xff]  ;;  %s260_s8 = sshll.u32 %s535_s7, 4  ;;  %s261_s8 = int_to_ptr.vmem [resolvable:$true] %s260_s8 }
  0x39   :  { %v157_v10 = vld [vmem:[#allocation7] sm:$0xff]  ;;  %v158_v11 = vld [vmem:[#allocation7 + $0x8] sm:$0xff]  ;;  %v160_v13 = vld [vmem:[#allocation7 + $0x18] sm:$0xff]  ;;  %v383_v14 = vpack.c.bf16 %v66_v9, %v65_v8  ;;  %p504_p11 = scmp.lt.s32.totalorder %s261_s8, %s261_s8 }
  0x3a   :  { %378 = vmatpush3.bf16.msra.mxu0 %v377_v5  ;;  %v401_v15 = vpack.c.bf16 %v158_v11, %v157_v10  ;;  %v67_v16 = vld [vmem:[#allocation5 + $0x30] sm:$0xff]  ;;  %v68_v17 = vld [vmem:[#allocation5 + $0x38] sm:$0xff]  ;;  %v404_v18 = vpack.c.bf16 %v160_v13, %v159_v12  ;;  %v161_v19 = vld [vmem:[#allocation7 + $0x20] sm:$0xff] }
  0x3b   :  { %379 = vmatprep.subr.bf16.mxu0 %v532_v0  ;;  %v162_v20 = vld [vmem:[#allocation7 + $0x28] sm:$0xff]  ;;  %v386_v21 = vpack.c.bf16 %v68_v17, %v67_v16  ;;  %v69_v22 = vld [vmem:[#allocation5 + $0x40] sm:$0xff]  ;;  %v163_v25 = vld [vmem:[#allocation7 + $0x30] sm:$0xff] }
  0x3c   :  { %402 = vmatpush3.bf16.msra.mxu1 %v401_v15  ;;  %v70_v23 = vld [vmem:[#allocation5 + $0x48] sm:$0xff]  ;;  %v407_v24 = vpack.c.bf16 %v162_v20, %v161_v19  ;;  %v164_v26 = vld [vmem:[#allocation7 + $0x38] sm:$0xff]  ;;  %v71_v28 = vld [vmem:[#allocation5 + $0x50] sm:$0xff] }
  0x3d   :  { %403 = vmatprep.subr.bf16.mxu1 %v532_v0  ;;  %v389_v27 = vpack.c.bf16 %v70_v23, %v69_v22  ;;  %v72_v29 = vld [vmem:[#allocation5 + $0x58] sm:$0xff]  ;;  %v410_v30 = vpack.c.bf16 %v164_v26, %v163_v25  ;;  %v165_v31 = vld [vmem:[#allocation7 + $0x40] sm:$0xff]  ;;  %v166_v32 = vld [vmem:[#allocation7 + $0x48] sm:$0xff] }
  0x3e   :  { %381 = vmatpush3.bf16.msra.mxu0 %v380_v7  ;;  %v392_v33 = vpack.c.bf16 %v72_v29, %v71_v28  ;;  %v73_v34 = vld [vmem:[#allocation5 + $0x60] sm:$0xff]  ;;  %v74_v35 = vld [vmem:[#allocation5 + $0x68] sm:$0xff]  ;;  %v413_v36 = vpack.c.bf16 %v166_v32, %v165_v31  ;;  %v167_v37 = vld [vmem:[#allocation7 + $0x50] sm:$0xff] }
  0x3f   :  { %382 = vmatprep.subr.bf16.mxu0 %v532_v0  ;;  %v168_v38 = vld [vmem:[#allocation7 + $0x58] sm:$0xff]  ;;  %v395_v39 = vpack.c.bf16 %v74_v35, %v73_v34  ;;  %v75_v40 = vld [vmem:[#allocation5 + $0x70] sm:$0xff]  ;;  %v169_v43 = vld [vmem:[#allocation7 + $0x60] sm:$0xff] }
  0x40   :  { %405 = vmatpush3.bf16.msra.mxu1 %v404_v18  ;;  %v76_v41 = vld [vmem:[#allocation5 + $0x78] sm:$0xff]  ;;  %v416_v42 = vpack.c.bf16 %v168_v38, %v167_v37  ;;  %v170_v44 = vld [vmem:[#allocation7 + $0x68] sm:$0xff]  ;;  %v171_v48 = vld [vmem:[#allocation7 + $0x70] sm:$0xff] }
  0x41   :  { %406 = vmatprep.subr.bf16.mxu1 %v532_v0  ;;  %v398_v45 = vpack.c.bf16 %v76_v41, %v75_v40  ;;  %v419_v46 = vpack.c.bf16 %v170_v44, %v169_v43  ;;  %v60_v47 = vld [vmem:[#allocation2] sm:$0xff] }
  0x42   :  { %384 = vmatpush3.bf16.msra.mxu0 %v383_v14  ;;  %v172_v49 = vld [vmem:[#allocation7 + $0x78] sm:$0xff] }
  0x43   :  { %385 = vmatprep.subr.bf16.mxu0 %v532_v0  ;;  %v422_v50 = vpack.c.bf16 %v172_v49, %v171_v48  ;;  %v270_v51 = vld [vmem:[%s644_s2] ss:$0 sm:$0xff]  ;;  %s499_s2 = scalar_lea.vmem %s261_s8, 128 }
  0x44   :  { %408 = vmatpush3.bf16.msra.mxu1 %v407_v24  ;;  %v271_v57 = vld [vmem:[%s646_s4] ss:$0 sm:$0xff]  ;;  %p500_p10 = scmp.ne.s32.totalorder %s261_s8, %s499_s2  ;;  %p505_p12 = scmp.lt.s32.totalorder %s499_s2, %s499_s2 }
  0x45   :  { %409 = vmatprep.subr.bf16.mxu1 %v532_v0 }
  0x46   :  { %387 = vmatpush3.bf16.msra.mxu0 %v386_v21  ;;  %p506_p13 = por %p505_p12, %p504_p11 }
  0x47   :  { %388 = vmatprep.subr.bf16.mxu0 %v532_v0 }
  0x48   :  { %411 = vmatpush3.bf16.msra.mxu1 %v410_v30  ;;  %p507_p0 = pnand %p506_p13, %p500_p10 }
  0x49   :  { %412 = vmatprep.subr.bf16.mxu1 %v532_v0 }
  0x4a   :  { %390 = vmatpush3.bf16.msra.mxu0 %v389_v27 }
  0x4b   :  { %391 = vmatprep.subr.bf16.mxu0 %v532_v0 }
  0x4c   :  { %414 = vmatpush3.bf16.msra.mxu1 %v413_v36 }
  0x4d   :  { %415 = vmatprep.subr.bf16.mxu1 %v532_v0 }
  0x4e   :  { %393 = vmatpush3.bf16.msra.mxu0 %v392_v33 }
  0x4f   :  { %394 = vmatprep.subr.bf16.mxu0 %v532_v0 }
  0x50   :  { %417 = vmatpush3.bf16.msra.mxu1 %v416_v42 }
  0x51   :  { %418 = vmatprep.subr.bf16.mxu1 %v532_v0 }
  0x52   :  { %396 = vmatpush3.bf16.msra.mxu0 %v395_v39 }
  0x53   :  { %397 = vmatprep.subr.bf16.mxu0 %v532_v0 }
  0x54   :  { %420 = vmatpush3.bf16.msra.mxu1 %v419_v46 }
  0x55   :  { %421 = vmatprep.subr.bf16.mxu1 %v532_v0 }
  0x56   :  { %399 = vmatpush3.bf16.msra.mxu0 %v398_v45 }
  0x58   :  { %423 = vmatpush3.bf16.msra.mxu1 %v422_v50 }
  0x59   :  { %339 = vmatmul.mubr.f32.vlgmr.msra.gmra.mrb[0].mxu0 %v60_v47 }
 0x12c   :  { %v150_v52 = vpop.f32.mrb[0].mxu0 }
 0x12d   :  { %v151_v53 = vadd.f32 %v270_v51, %v150_v52  ;;  %v340_v54 = vpop.f32.mrb[1].mxu0 }
 0x12f   :  { %v155_v55 = vmul.f32 0.01, %v151_v53  ;;  %vm154_vm1 = vcmp.ge.f32.partialorder %v151_v53, 0.0 }
 0x131   :  { %v156_v56 = vsel %vm154_vm1, %v151_v53, %v155_v55 }
 0x132   :  { %374 = vmatmul.mubr.f32.vlgmr.msra.gmra.mrb[0].mxu1 %v156_v56 }
 0x205   :  { %v246_v58 = vpop.f32.mrb[0].mxu1 }
 0x206   :  { %v247_v59 = vadd.f32 %v271_v57, %v246_v58  ;;  %v375_v60 = vpop.f32.mrb[1].mxu1 }
 0x208   :  { %v251_v61 = vmul.f32 0.01, %v247_v59  ;;  %vm250_vm2 = vcmp.ge.f32.partialorder %v247_v59, 0.0 }
 0x20a   :  { %v252_v62 = vsel %vm250_vm2, %v247_v59, %v251_v61 }
 0x20b   :  { %253 = vst [vmem:[#allocation8] sm:$0xff] %v252_v62 }
 0x20c   :  { %510 = shalt.err (!%p507_p0)
}
 0x20d   :  { %s511_s4 = scalar_lea.hbm %s647_s5, 128 }
 0x20e   :  { %p512_p1 = scmp.ne.s32.totalorder %s647_s5, %s511_s4  ;;  %p515_p2 = scmp.lt.u32.totalorder %s511_s4, %s647_s5 }
 0x210   :  { %p517_p3 = pnand %p515_p2, %p512_p1 }
 0x212   :  { %520 = shalt.err (!%p517_p3)
}
 0x213   :  { %263 = dma.vmem_to_hbm [thread:$0]  %s261_s8, 128, %s647_s5, [#allocation4]  }
 0x214   :  { %525 = dma.done.wait [#allocation4], 128  }
 0x215   :  { %526 = vsyncadd [#allocation4], 4294967168 }
 0x216   :  { %267 = vsyncpa [#allocation3], 1 }
 0x217   :  { %268 = vsyncpa [#allocation6], 1 }
 0x218   :  { %269 = vsyncpa [#allocation4], 1 }

</bundles_post_ra>
